<compile_context>
chip_gen: v5e
topology: v5e:2x2
jax: 0.10.0
libtpu: 0.0.40
codegen_flags: <defaults>
</compile_context>

<pallas_src>
import math

import jax
import jax.numpy as jnp
from jax import lax
from jax.experimental import pallas as pl
from jax.experimental.pallas import tpu as pltpu


_VMEM_LIMIT = 48 * 1024 * 1024  # <= v7x physical (64 MiB), > scoped defaults


def _pick_tile(dim, target, align):
    """Largest `align`-multiple divisor of `dim` that is <= target, else `dim`."""
    if dim <= target:
        return dim
    t = (target // align) * align
    while t >= align:
        if dim % t == 0:
            return t
        t -= align
    return dim  # fall back to the full (untiled) dimension


# ----------------------------- tiled linear ---------------------------------

def _linear_kernel(x_ref, w_ref, b_ref, o_ref, acc_ref):
    @pl.when(pl.program_id(2) == 0)
    def _():
        acc_ref[...] = jnp.zeros_like(acc_ref)

    # bf16 x bf16 -> f32 accumulate on the MXU; RHS already [K, N] (no .T).
    acc_ref[...] += jnp.dot(x_ref[...], w_ref[...],
                            preferred_element_type=jnp.float32)

    @pl.when(pl.program_id(2) == pl.num_programs(2) - 1)
    def _():
        o_ref[...] = (acc_ref[...] + b_ref[...]).astype(o_ref.dtype)


def linear_pallas(x, w_t, b, *, out_dtype=jnp.float32):
    """y = x @ w_t + b.  x: [M, K], w_t: [K, N] (pre-transposed), b: [N]."""
    M, K = x.shape
    N = w_t.shape[1]
    x = x.astype(jnp.bfloat16)
    w_t = w_t.astype(jnp.bfloat16)
    b = b.reshape(1, N).astype(jnp.float32)

    tm = _pick_tile(M, 256, 16)
    tn = _pick_tile(N, 256, 128)
    tk = _pick_tile(K, 512, 128)

    return pl.pallas_call(
        _linear_kernel,
        out_shape=jax.ShapeDtypeStruct((M, N), out_dtype),
        grid=(M // tm, N // tn, K // tk),
        in_specs=[
            pl.BlockSpec((tm, tk), lambda i, j, k: (i, k)),
            pl.BlockSpec((tk, tn), lambda i, j, k: (k, j)),
            pl.BlockSpec((1, tn), lambda i, j, k: (0, j)),
        ],
        out_specs=pl.BlockSpec((tm, tn), lambda i, j, k: (i, j)),
        scratch_shapes=[pltpu.VMEM((tm, tn), jnp.float32)],
        compiler_params=pltpu.CompilerParams(
            dimension_semantics=("parallel", "parallel", "arbitrary"),
            vmem_limit_bytes=_VMEM_LIMIT),
    )(x, w_t, b)


# ------------------------ flash-style attention core ------------------------

def flash_attention_pallas(q_bh, k_bh, v_bh, mask_b, nh, coeff):
    """q/k/v: [B*H, S, D] bf16; mask_b: [B, S, S] f32 (>0 means masked)."""
    BH, S, D = q_bh.shape
    scale = 1.0 / (math.sqrt(D) * coeff)

    tq = _pick_tile(S, 256, 16)
    tk = _pick_tile(S, 512, 128)   # mask lane dim -> 128-aligned or full S
    nq, nk = S // tq, S // tk

    def kernel(q_ref, k_ref, v_ref, m_ref, o_ref, m_sc, l_sc, acc_sc):
        @pl.when(pl.program_id(2) == 0)
        def _():
            m_sc[...] = jnp.full_like(m_sc, -jnp.inf)
            l_sc[...] = jnp.zeros_like(l_sc)
            acc_sc[...] = jnp.zeros_like(acc_sc)

        # Scores: contract on D explicitly (no in-kernel K transpose).
        s = lax.dot_general(q_ref[...], k_ref[...],
                            (((1,), (1,)), ((), ())),
                            preferred_element_type=jnp.float32)   # [tq, tk]
        s = s * scale                               # q / (sqrt(D) * coeff)
        s = jnp.where(m_ref[...] > 0, -10000.0, s)  # masked_fill_(mask, -1e4)
        s = s * coeff                               # query_key scaling coeff

        # Online softmax (all f32 vector math).
        m_prev = m_sc[...]
        m_new = jnp.maximum(m_prev, jnp.max(s, axis=-1, keepdims=True))
        alpha = jnp.exp(m_prev - m_new)
        p = jnp.exp(s - m_new)
        l_sc[...] = alpha * l_sc[...] + jnp.sum(p, axis=-1, keepdims=True)
        acc_sc[...] = alpha * acc_sc[...] + jnp.dot(
            p.astype(v_ref.dtype), v_ref[...],
            preferred_element_type=jnp.float32)
        m_sc[...] = m_new

        @pl.when(pl.program_id(2) == pl.num_programs(2) - 1)
        def _():
            o_ref[...] = (acc_sc[...] *
                          pl.reciprocal(l_sc[...], approx=True)
                          ).astype(o_ref.dtype)

    return pl.pallas_call(
        kernel,
        out_shape=jax.ShapeDtypeStruct((BH, S, D), jnp.bfloat16),
        grid=(BH, nq, nk),
        in_specs=[
            pl.BlockSpec((None, tq, D), lambda b, qi, ki: (b, qi, 0)),
            pl.BlockSpec((None, tk, D), lambda b, qi, ki: (b, ki, 0)),
            pl.BlockSpec((None, tk, D), lambda b, qi, ki: (b, ki, 0)),
            # Mask shared across all heads of a batch element (no per-head copy).
            pl.BlockSpec((None, tq, tk), lambda b, qi, ki: (b // nh, qi, ki)),
        ],
        out_specs=pl.BlockSpec((None, tq, D), lambda b, qi, ki: (b, qi, 0)),
        scratch_shapes=[
            pltpu.VMEM((tq, 1), jnp.float32),   # running max
            pltpu.VMEM((tq, 1), jnp.float32),   # running sum
            pltpu.VMEM((tq, D), jnp.float32),   # output accumulator
        ],
        compiler_params=pltpu.CompilerParams(
            dimension_semantics=("parallel", "parallel", "arbitrary"),
            vmem_limit_bytes=_VMEM_LIMIT),
    )(q_bh, k_bh, v_bh, mask_b)


# ----------------------------- JAX glue --------------------------------------

def rotate_half(x):
    half = x.shape[-1] // 2
    x1, x2 = x[..., :half], x[..., half:]
    return jnp.concatenate((-x2, x1), axis=-1)


def apply_rotary_pos_emb_index(q, k, cos_table, sin_table, position_id):
    # position_id: [S, B]; tables: [L, rot] (f16)
    cos = cos_table[position_id][:, :, None, :]   # [S, B, 1, rot]
    sin = sin_table[position_id][:, :, None, :]
    q = q * cos + rotate_half(q) * sin
    k = k * cos + rotate_half(k) * sin
    return q, k


def make_rotary_tables(rot_dim, seq_len):
    # Mirrors RotaryEmbedding(precision=torch.half): half-precision tables.
    inv_freq = (1.0 / (10000.0 ** (jnp.arange(0, rot_dim, 2, dtype=jnp.float32)
                                   / rot_dim))).astype(jnp.float16)
    t = jnp.arange(seq_len, dtype=jnp.float16)
    freqs = jnp.einsum("i,j->ij", t, inv_freq)
    emb = jnp.concatenate((freqs, freqs), axis=-1)        # [L, rot]
    return jnp.cos(emb), jnp.sin(emb)                     # f16


def self_attention_forward(hidden_states, position_ids, attention_mask,
                           params, layer_id, num_heads,
                           position_encoding_2d=True):
    S, B, H = hidden_states.shape
    nh = num_heads
    hd = H // nh

    # ---- QKV projection (tiled Pallas matmul, pre-transposed weight) ----
    mixed = linear_pallas(hidden_states.reshape(S * B, H),
                          params["qkv_w_t"], params["qkv_b"])
    mixed = mixed.reshape(S, B, nh, 3 * hd)
    q, k, v = jnp.split(mixed, 3, axis=-1)                 # each [S, B, nh, hd]

    # ---- Rotary (2D position encoding), plain-JAX glue ----
    # TODO(synk): fuse rotary into the attention kernel with pltpu.roll and
    # handle layer_past / use_cache (KV cache concat) — not exercised here.
    rot_dim = hd // 2 if position_encoding_2d else hd
    cos_t, sin_t = make_rotary_tables(rot_dim, S)
    pos = position_ids[:, 0, :].T                          # [S, B]
    block_pos = position_ids[:, 1, :].T
    q1, q2 = q[..., : hd // 2], q[..., hd // 2:]
    k1, k2 = k[..., : hd // 2], k[..., hd // 2:]
    q1, k1 = apply_rotary_pos_emb_index(q1, k1, cos_t, sin_t, pos)
    q2, k2 = apply_rotary_pos_emb_index(q2, k2, cos_t, sin_t, block_pos)
    q = jnp.concatenate([q1, q2], axis=-1)
    k = jnp.concatenate([k1, k2], axis=-1)

    # ---- Attention core (flash-style Pallas kernel) ----
    coeff = float(layer_id + 1)
    def to_bh(t):   # cast to bf16 BEFORE the layout change (halves HBM traffic)
        return t.astype(jnp.bfloat16).reshape(S, B * nh, hd).transpose(1, 0, 2)
    q_bh, k_bh, v_bh = to_bh(q), to_bh(k), to_bh(v)        # [BH, S, D] bf16
    mask_b = attention_mask.astype(jnp.float32).reshape(B, S, S)

    ctx = flash_attention_pallas(q_bh, k_bh, v_bh, mask_b, nh, coeff)  # bf16

    # [BH,S,D] -> [B,nh,S,D] -> [S,B,nh,D] -> [S*B, H]
    ctx = ctx.reshape(B, nh, S, hd).transpose(2, 0, 1, 3).reshape(S * B, nh * hd)

    # ---- Output projection (tiled Pallas matmul) ----
    out = linear_pallas(ctx, params["dense_w_t"], params["dense_b"])
    return out.reshape(S, B, H)


# ----------------------------- main ------------------------------------------

if __name__ == "__main__":
    S, B, hidden, nheads = 8, 2, 32, 4
    layer_id = 1

    key = jax.random.PRNGKey(0)
    k1, k2, k3, k4, k5 = jax.random.split(key, 5)

    hidden_states = jax.random.normal(k1, (S, B, hidden), dtype=jnp.float32)

    pos = jnp.broadcast_to(jnp.arange(S, dtype=jnp.int32), (B, S))
    block_pos = jnp.broadcast_to(jnp.arange(S, dtype=jnp.int32), (B, S))
    position_ids = jnp.stack([pos, block_pos], axis=1)          # [B, 2, S]

    # ChatGLM-style boolean mask: True -> masked (causal upper triangle here).
    attention_mask = jnp.triu(jnp.ones((S, S), dtype=jnp.bool_), k=1)
    attention_mask = jnp.broadcast_to(attention_mask[None, None], (B, 1, S, S))

    qkv_w = 0.02 * jax.random.normal(k2, (3 * hidden, hidden), jnp.float32)
    dense_w = 0.02 * jax.random.normal(k4, (hidden, hidden), jnp.float32)
    params = {
        # Weights pre-transposed once ([out,in] -> [in,out]) for the MXU RHS.
        "qkv_w_t": qkv_w.T,
        "qkv_b": 0.02 * jax.random.normal(k3, (3 * hidden,), jnp.float32),
        "dense_w_t": dense_w.T,
        "dense_b": 0.02 * jax.random.normal(k5, (hidden,), jnp.float32),
    }

    out = self_attention_forward(hidden_states, position_ids, attention_mask,
                                 params, layer_id, nheads)
    jax.block_until_ready(out)
    assert out.shape == (S, B, hidden)
    print("KERNEL_OK")
</pallas_src>

<mosaic_0001>
module attributes {stable_mosaic.version = 11 : i64} {
  func.func @_linear_kernel(%arg0: i32, %arg1: i32, %arg2: i32, %arg3: memref<16x32xbf16, #tpu.memory_space<vmem>>, %arg4: memref<32x96xbf16, #tpu.memory_space<vmem>>, %arg5: memref<1x96xf32, #tpu.memory_space<vmem>>, %arg6: memref<16x96xf32, #tpu.memory_space<vmem>>, %arg7: memref<16x96xf32, #tpu.memory_space<vmem>>) attributes {dimension_semantics = [#tpu.dimension_semantics<parallel>, #tpu.dimension_semantics<parallel>, #tpu.dimension_semantics<arbitrary>], iteration_bounds = array<i64: 1, 1, 1>, scalar_prefetch = 0 : i64, scratch_operands = 1 : i64, tpu.core_type = #tpu.core_type<tc>, window_params = [{transform_indices = @transform_0, window_bounds = array<i64: 16, 32>}, {transform_indices = @transform_1, window_bounds = array<i64: 32, 96>}, {transform_indices = @transform_2, window_bounds = array<i64: 1, 96>}, {transform_indices = @transform_3, window_bounds = array<i64: 16, 96>}]} {
    %c0_i32 = arith.constant 0 : i32
    %0 = arith.cmpi eq, %arg2, %c0_i32 : i32
    %1 = arith.extui %0 : i1 to i32
    %c0_i32_0 = arith.constant 0 : i32
    %2 = arith.cmpi ne, %1, %c0_i32_0 : i32
    scf.if %2 {
      %cst_10 = arith.constant 0.000000e+00 : f32
      %12 = vector.broadcast %cst_10 : f32 to vector<16x96xf32>
      %c0_11 = arith.constant 0 : index
      %c0_12 = arith.constant 0 : index
      %13 = vector.load %arg7[%c0_11, %c0_12] : memref<16x96xf32, #tpu.memory_space<vmem>>, vector<16x96xf32>
      tpu.vector_store %arg7[%c0_11, %c0_12], %12 {strides = array<i32>} : memref<16x96xf32, #tpu.memory_space<vmem>>, vector<16x96xf32>,
    } else {
    }
    %c0 = arith.constant 0 : index
    %c0_1 = arith.constant 0 : index
    %3 = vector.load %arg7[%c0, %c0_1] : memref<16x96xf32, #tpu.memory_space<vmem>>, vector<16x96xf32>
    %c0_2 = arith.constant 0 : index
    %c0_3 = arith.constant 0 : index
    %4 = vector.load %arg3[%c0_2, %c0_3] : memref<16x32xbf16, #tpu.memory_space<vmem>>, vector<16x32xbf16>
    %c0_4 = arith.constant 0 : index
    %c0_5 = arith.constant 0 : index
    %5 = vector.load %arg4[%c0_4, %c0_5] : memref<32x96xbf16, #tpu.memory_space<vmem>>, vector<32x96xbf16>
    %cst = arith.constant dense<0.000000e+00> : vector<16x96xf32>
    %6 = tpu.matmul %4, %5, %cst {dimension_numbers = #tpu.dot_dimension_numbers<[1], [0], [0], [1], [0, 0, 1, 1], [], []>} : vector<16x32xbf16>, vector<32x96xbf16>, vector<16x96xf32> -> vector<16x96xf32>
    %7 = arith.addf %3, %6 : vector<16x96xf32>
    %c0_6 = arith.constant 0 : index
    %c0_7 = arith.constant 0 : index
    %8 = vector.load %arg7[%c0_6, %c0_7] : memref<16x96xf32, #tpu.memory_space<vmem>>, vector<16x96xf32>
    tpu.vector_store %arg7[%c0_6, %c0_7], %7 {strides = array<i32>} : memref<16x96xf32, #tpu.memory_space<vmem>>, vector<16x96xf32>,
    %c0_i32_8 = arith.constant 0 : i32
    %9 = arith.cmpi eq, %arg2, %c0_i32_8 : i32
    %10 = arith.extui %9 : i1 to i32
    %c0_i32_9 = arith.constant 0 : i32
    %11 = arith.cmpi ne, %10, %c0_i32_9 : i32
    scf.if %11 {
      %c0_10 = arith.constant 0 : index
      %c0_11 = arith.constant 0 : index
      %12 = vector.load %arg7[%c0_10, %c0_11] : memref<16x96xf32, #tpu.memory_space<vmem>>, vector<16x96xf32>
      %c0_12 = arith.constant 0 : index
      %c0_13 = arith.constant 0 : index
      %13 = vector.load %arg5[%c0_12, %c0_13] : memref<1x96xf32, #tpu.memory_space<vmem>>, vector<1x96xf32>
      %14 = vector.broadcast %13 : vector<1x96xf32> to vector<16x96xf32>
      %15 = arith.addf %12, %14 : vector<16x96xf32>
      %c0_14 = arith.constant 0 : index
      %c0_15 = arith.constant 0 : index
      %16 = vector.load %arg6[%c0_14, %c0_15] : memref<16x96xf32, #tpu.memory_space<vmem>>, vector<16x96xf32>
      tpu.vector_store %arg6[%c0_14, %c0_15], %15 {strides = array<i32>} : memref<16x96xf32, #tpu.memory_space<vmem>>, vector<16x96xf32>,
    } else {
    }
    return
  }
  func.func @transform_0(%arg0: i32, %arg1: i32, %arg2: i32) -> (i32, i32) {
    %c0_i32 = arith.constant 0 : i32
    return %arg0, %arg2 : i32, i32
  }
  func.func @transform_1(%arg0: i32, %arg1: i32, %arg2: i32) -> (i32, i32) {
    %c0_i32 = arith.constant 0 : i32
    return %arg2, %arg1 : i32, i32
  }
  func.func @transform_2(%arg0: i32, %arg1: i32, %arg2: i32) -> (i32, i32) {
    %c0_i32 = arith.constant 0 : i32
    %c0_i32_0 = arith.constant 0 : i32
    return %c0_i32, %arg1 : i32, i32
  }
  func.func @transform_3(%arg0: i32, %arg1: i32, %arg2: i32) -> (i32, i32) {
    %c0_i32 = arith.constant 0 : i32
    return %arg0, %arg1 : i32, i32
  }
}

</mosaic_0001>

<bundles_post_ra>
// kernel: tpu_custom_call.1
= control target key start
LH: loop header
LB: loop body
LE: loop exit
PB: predicated region body
PF: predicated region fallthrough
CT: control target
= control target key end

     0   :  { %8 = vsyncpa [#allocation4], 0  ;;  %s285_s0 = inlined_call_operand.hbm [shape: bf16[16,32], index: 0, kind: input, shape index: {}]   ;;  %s286_s1 = inlined_call_operand.hbm [shape: bf16[32,96], index: 1, kind: input, shape index: {}]   ;;  %s287_s2 = inlined_call_operand.vmem [shape: f32[1,96], index: 2, kind: input, shape index: {}]   ;;  %s288_s3 = inlined_call_operand.hbm [shape: f32[16,96], index: 3, kind: output, shape index: {}]  }
   0x1   :  { %9 = vsyncpa [#allocation7], 0 }
   0x2   :  { %10 = vsyncpa [#allocation5], 0  ;;  %s15_s14 = sshll.u32 %s285_s0, 4  ;;  %s239_s15 = smov [#allocation3]   ;;  %s16_s14 = int_to_ptr.hbm [resolvable:$true] %s15_s14 }
   0x3   :  { %s17_s16 = sshll.u32 %s239_s15, 4  ;;  %s28_s19 = sshll.u32 %s286_s1, 4  ;;  %s18_s16 = int_to_ptr.vmem [resolvable:$true] %s17_s16  ;;  %s29_s19 = int_to_ptr.hbm [resolvable:$true] %s28_s19 }
   0x4   :  { %s240_s20 = smov 64   ;;  %s241_s21 = smov 4  }
   0x5   :  { %23 = dma.hbm_to_vmem [thread:$0]  %s16_s14, 128, %s18_s16, [#allocation4], %s240_s20, %s240_s20, %s241_s21  }
   0x6   :  { %s242_s22 = smov [#allocation6]  }
   0x7   :  { %s30_s23 = sshll.u32 %s242_s22, 4  ;;  %s31_s23 = int_to_ptr.vmem [resolvable:$true] %s30_s23 }
   0x8   :  { %36 = dma.hbm_to_vmem [thread:$0]  %s29_s19, 256, %s31_s23, [#allocation7], %s240_s20, %s240_s20, %s241_s21  }
   0x9   :  { %233 = dma.done.wait [#allocation4], 128  }
   0xa   :  { %234 = vsyncadd [#allocation4], 4294967168 }
   0xb   :  { %235 = dma.done.wait [#allocation7], 256  }
   0xc   :  { %236 = vsyncadd [#allocation7], 4294967040  ;;  %vm52_vm0 = vcmask 785408   ;;  %v243_v0 = vmov 0.0   ;;  %v151_v1 = vld [vmem:[#allocation6 + $0x8] sm:$0xff]  ;;  %v150_v2 = vld [vmem:[#allocation6] sm:$0xff] }
   0xd   :  { %53 = vst.msk [vmem:[#allocation2] sm:$0xff] %vm52_vm0, %v243_v0  ;;  %90 = vmatpush.bf16.msra.mxu0 %v151_v1  ;;  %v149_v3 = vld [vmem:[#allocation3] sm:$0xff]  ;;  %vm80_vm1 = vcmask 261120   ;;  %v160_v8 = vld [vmem:[%s287_s2] ss:$0 sm:$0xff]  ;;  %s244_s24 = smov [#allocation8]  }
   0xe   :  { %54 = vst.msk [vmem:[#allocation2 + $0x8] sm:$0xff] %vm52_vm0, %v243_v0  ;;  %s120_s25 = sshll.u32 %s244_s24, 4  ;;  %s122_s28 = sshll.u32 %s288_s3, 4  ;;  %s121_s25 = int_to_ptr.vmem [resolvable:$true] %s120_s25  ;;  %s123_s28 = int_to_ptr.hbm [resolvable:$true] %s122_s28 }
   0xf   :  { %s245_s2 = smov 128   ;;  %s246_s29 = smov 8  }
  0x11   :  { %91 = vmatpush.bf16.msra.mxu0 %v150_v2 }
  0x14   :  { %148 = vmatmul.msk.bf16.vlgmr.msra.gmra.mxu0 %vm80_vm1, %v149_v3  ;;  %v55_v4 = vld [vmem:[#allocation2] sm:$0xff] }
  0x15   :  { %v56_v7 = vld [vmem:[#allocation2 + $0x8] sm:$0xff] }
  0x91   :  { %v93_v5 = vpop.f32.mrf.mxu0 }
  0x92   :  { %v98_v6 = vadd.f32 %v93_v5, %v55_v4 }
  0x94   :  { %101 = vst.msk [vmem:[#allocation2] sm:$0xff] %vm52_vm0, %v98_v6 }
  0x99   :  { %v95_v9 = vpop.f32.mrf.mxu0 }
  0x9a   :  { %v99_v10 = vadd.f32 %v95_v9, %v56_v7 }
  0x9b   :  { %v106_v11 = vld [vmem:[#allocation2] sm:$0xff] }
  0x9c   :  { %102 = vst.msk [vmem:[#allocation2 + $0x8] sm:$0xff] %vm52_vm0, %v99_v10  ;;  %v112_v12 = vadd.f32 %v160_v8, %v106_v11 }
  0x9e   :  { %114 = vst.msk [vmem:[#allocation8] sm:$0xff] %vm52_vm0, %v112_v12 }
  0xa3   :  { %v107_v13 = vld [vmem:[#allocation2 + $0x8] sm:$0xff] }
  0xa4   :  { %v113_v14 = vadd.f32 %v160_v8, %v107_v13 }
  0xa6   :  { %115 = vst.msk [vmem:[#allocation8 + $0x8] sm:$0xff] %vm52_vm0, %v113_v14 }
  0xa7   :  { %128 = dma.vmem_to_hbm [thread:$0]  %s121_s25, 256, %s123_s28, [#allocation5], %s245_s2, %s245_s2, %s246_s29  }
  0xa8   :  { %237 = dma.done.wait [#allocation5], 256  }
  0xa9   :  { %238 = vsyncadd [#allocation5], 4294967040 }
  0xaa   :  { %133 = vsyncpa [#allocation4], 1 }
  0xab   :  { %134 = vsyncpa [#allocation7], 1 }
  0xac   :  { %135 = vsyncpa [#allocation5], 1 }

</bundles_post_ra>
